<compile_context>
chip_gen: v7x
topology: tpu7x:2x2x1
jax: 0.10.0
libtpu: 0.0.40
codegen_flags: <defaults>
</compile_context>

<pallas_src>
import numpy as np
import jax
import jax.numpy as jnp
from jax.experimental import pallas as pl
from jax.experimental.pallas import tpu as pltpu


def _pick_tile(Px, row_bytes, target_bytes):
    """Pick the patch-row tile Tp.

    Constraints: Tp divides Px and (Tp % 8 == 0 or Tp == Px) so the
    second-to-last block dim satisfies the (8, 128) BlockSpec rule.
    Preference: the largest tile whose block stays under target_bytes; if that
    tile is the whole array but a >=256 KiB smaller tile exists, use the
    smaller one so the grid has >= 2 steps (megacore on v7x).
    """
    cands = [d for d in range(1, Px + 1)
             if Px % d == 0 and (d % 8 == 0 or d == Px)]
    fitting = [d for d in cands if d * row_bytes <= target_bytes]
    if not fitting:
        return min(cands)
    tp = max(fitting)
    if tp == Px:
        smaller = [d for d in fitting if d < Px]
        if smaller and max(smaller) * row_bytes >= (256 << 10):
            tp = max(smaller)
    return tp


def patch2d_forward(x, nx, ny, Lx, Ly, *, target_block_bytes=4 << 20):
    """Pallas implementation of Patch2D.forward.

    x: [B, L] array (any dtype), L = Lx*Ly, row-major over (Lx, Ly).
    Returns [B, L // (nx*ny), nx*ny] in the same dtype.
    """
    B, L = x.shape
    assert L == Lx * Ly
    assert Lx % nx == 0 and Ly % ny == 0
    Px, Py, n2 = Lx // nx, Ly // ny, nx * ny
    W = nx * Ly                       # = Py * n2: one patch-row strip (lane dim)

    # Free contiguous views: one patch-row strip per middle index.
    x3 = x.reshape(B, Px, W)

    row_bytes = B * W * x.dtype.itemsize
    Tp = _pick_tile(Px, row_bytes, target_block_bytes)

    def kernel(x_ref, o_ref):
        # x_ref / o_ref: [B, Tp, W] -- lane-dense, full-width rows.
        v = x_ref[...]                                    # single wide load
        if nx == 1 or Py == 1:
            # Permutation is the identity within a strip.
            o_ref[...] = v
            return
        # Assemble the permuted strip with static lane slices (register-side
        # shuffle work), then write it back with a single full-width store.
        parts = []
        for py in range(Py):
            base = py * ny
            for i in range(nx):
                s = i * Ly + base
                parts.append(v[:, :, s:s + ny])
        o_ref[...] = jnp.concatenate(parts, axis=-1)      # single wide store

    out3 = pl.pallas_call(
        kernel,
        out_shape=jax.ShapeDtypeStruct((B, Px, W), x.dtype),
        grid_spec=pltpu.PrefetchScalarGridSpec(
            num_scalar_prefetch=0,
            grid=(Px // Tp,),
            in_specs=[pl.BlockSpec((B, Tp, W), lambda p: (0, p, 0))],
            out_specs=pl.BlockSpec((B, Tp, W), lambda p: (0, p, 0)),
        ),
        compiler_params=pltpu.CompilerParams(
            dimension_semantics=("parallel",),
        ),
    )(x3)

    # Contiguous merge (Px, Py*n2) -> (Px*Py, n2): free view, no data movement.
    return out3.reshape(B, Px * Py, n2)


def patch2d_reference(x, nx, ny, Lx, Ly):
    """Pure-JAX reference (same semantics as the torch unfold chain)."""
    B = x.shape[0]
    x5 = x.reshape(B, Lx // nx, nx, Ly // ny, ny)
    x5 = jnp.transpose(x5, (0, 1, 3, 2, 4))
    return x5.reshape(B, (Lx * Ly) // (nx * ny), nx * ny)


if __name__ == "__main__":
    def check(B, Lx, Ly, nx, ny, dtype, target=4 << 20):
        L = Lx * Ly
        key = jax.random.PRNGKey(0)
        if jnp.issubdtype(dtype, jnp.floating):
            x = jax.random.normal(key, (B, L), dtype=dtype)
        else:
            x = jnp.arange(B * L, dtype=dtype).reshape(B, L)
        out = jax.block_until_ready(
            patch2d_forward(x, nx, ny, Lx, Ly, target_block_bytes=target))
        ref = patch2d_reference(x, nx, ny, Lx, Ly)
        assert out.shape == (B, L // (nx * ny), nx * ny), out.shape
        assert out.dtype == x.dtype, out.dtype
        np.testing.assert_array_equal(np.asarray(out), np.asarray(ref))

    # Module-consistent small shape: B=2, 16x16 image, 2x2 patches.
    check(2, 16, 16, 2, 2, jnp.float32)
    # Asymmetric patch (exercises the (nx, Py, ny) index math).
    check(2, 16, 16, 2, 4, jnp.float32)
    # Integer input: pure permutation must be exact in any dtype.
    check(2, 16, 16, 2, 2, jnp.int32)
    # Forced-small block target -> multi-step grid (pipelined / megacore path).
    check(2, 64, 64, 2, 2, jnp.float32, target=8 << 10)

    print("KERNEL_OK")
</pallas_src>

<mosaic_0001>
module attributes {stable_mosaic.version = 11 : i64} {
  func.func @kernel(%arg0: i32, %arg1: memref<2x8x32xf32, #tpu.memory_space<vmem>>, %arg2: memref<2x8x32xf32, #tpu.memory_space<vmem>>) attributes {dimension_semantics = [#tpu.dimension_semantics<parallel>], iteration_bounds = array<i64: 1>, scalar_prefetch = 0 : i64, scratch_operands = 0 : i64, tpu.core_type = #tpu.core_type<tc>, window_params = [{transform_indices = @transform_0, window_bounds = array<i64: 2, 8, 32>}, {transform_indices = @transform_1, window_bounds = array<i64: 2, 8, 32>}]} {
    %c0 = arith.constant 0 : index
    %c0_0 = arith.constant 0 : index
    %c0_1 = arith.constant 0 : index
    %0 = vector.load %arg1[%c0, %c0_0, %c0_1] : memref<2x8x32xf32, #tpu.memory_space<vmem>>, vector<2x8x32xf32>
    %1 = vector.extract_strided_slice %0 {offsets = [0, 0, 0], sizes = [2, 8, 2], strides = [1, 1, 1]} : vector<2x8x32xf32> to vector<2x8x2xf32>
    %2 = vector.extract_strided_slice %0 {offsets = [0, 0, 16], sizes = [2, 8, 2], strides = [1, 1, 1]} : vector<2x8x32xf32> to vector<2x8x2xf32>
    %3 = vector.extract_strided_slice %0 {offsets = [0, 0, 2], sizes = [2, 8, 2], strides = [1, 1, 1]} : vector<2x8x32xf32> to vector<2x8x2xf32>
    %4 = vector.extract_strided_slice %0 {offsets = [0, 0, 18], sizes = [2, 8, 2], strides = [1, 1, 1]} : vector<2x8x32xf32> to vector<2x8x2xf32>
    %5 = vector.extract_strided_slice %0 {offsets = [0, 0, 4], sizes = [2, 8, 2], strides = [1, 1, 1]} : vector<2x8x32xf32> to vector<2x8x2xf32>
    %6 = vector.extract_strided_slice %0 {offsets = [0, 0, 20], sizes = [2, 8, 2], strides = [1, 1, 1]} : vector<2x8x32xf32> to vector<2x8x2xf32>
    %7 = vector.extract_strided_slice %0 {offsets = [0, 0, 6], sizes = [2, 8, 2], strides = [1, 1, 1]} : vector<2x8x32xf32> to vector<2x8x2xf32>
    %8 = vector.extract_strided_slice %0 {offsets = [0, 0, 22], sizes = [2, 8, 2], strides = [1, 1, 1]} : vector<2x8x32xf32> to vector<2x8x2xf32>
    %9 = vector.extract_strided_slice %0 {offsets = [0, 0, 8], sizes = [2, 8, 2], strides = [1, 1, 1]} : vector<2x8x32xf32> to vector<2x8x2xf32>
    %10 = vector.extract_strided_slice %0 {offsets = [0, 0, 24], sizes = [2, 8, 2], strides = [1, 1, 1]} : vector<2x8x32xf32> to vector<2x8x2xf32>
    %11 = vector.extract_strided_slice %0 {offsets = [0, 0, 10], sizes = [2, 8, 2], strides = [1, 1, 1]} : vector<2x8x32xf32> to vector<2x8x2xf32>
    %12 = vector.extract_strided_slice %0 {offsets = [0, 0, 26], sizes = [2, 8, 2], strides = [1, 1, 1]} : vector<2x8x32xf32> to vector<2x8x2xf32>
    %13 = vector.extract_strided_slice %0 {offsets = [0, 0, 12], sizes = [2, 8, 2], strides = [1, 1, 1]} : vector<2x8x32xf32> to vector<2x8x2xf32>
    %14 = vector.extract_strided_slice %0 {offsets = [0, 0, 28], sizes = [2, 8, 2], strides = [1, 1, 1]} : vector<2x8x32xf32> to vector<2x8x2xf32>
    %15 = vector.extract_strided_slice %0 {offsets = [0, 0, 14], sizes = [2, 8, 2], strides = [1, 1, 1]} : vector<2x8x32xf32> to vector<2x8x2xf32>
    %16 = vector.extract_strided_slice %0 {offsets = [0, 0, 30], sizes = [2, 8, 2], strides = [1, 1, 1]} : vector<2x8x32xf32> to vector<2x8x2xf32>
    %17 = tpu.concatenate %1, %2, %3, %4, %5, %6, %7, %8, %9, %10, %11, %12, %13, %14, %15, %16 in 2 : vector<2x8x2xf32>, vector<2x8x2xf32>, vector<2x8x2xf32>, vector<2x8x2xf32>, vector<2x8x2xf32>, vector<2x8x2xf32>, vector<2x8x2xf32>, vector<2x8x2xf32>, vector<2x8x2xf32>, vector<2x8x2xf32>, vector<2x8x2xf32>, vector<2x8x2xf32>, vector<2x8x2xf32>, vector<2x8x2xf32>, vector<2x8x2xf32>, vector<2x8x2xf32> -> vector<2x8x32xf32>
    %c0_2 = arith.constant 0 : index
    %c0_3 = arith.constant 0 : index
    %c0_4 = arith.constant 0 : index
    %18 = vector.load %arg2[%c0_2, %c0_3, %c0_4] : memref<2x8x32xf32, #tpu.memory_space<vmem>>, vector<2x8x32xf32>
    tpu.vector_store %arg2[%c0_2, %c0_3, %c0_4], %17 {strides = array<i32>} : memref<2x8x32xf32, #tpu.memory_space<vmem>>, vector<2x8x32xf32>,
    return
  }
  func.func @transform_0(%arg0: i32) -> (i32, i32, i32) {
    %c0_i32 = arith.constant 0 : i32
    %c0_i32_0 = arith.constant 0 : i32
    %c0_i32_1 = arith.constant 0 : i32
    return %c0_i32, %arg0, %c0_i32_0 : i32, i32, i32
  }
  func.func @transform_1(%arg0: i32) -> (i32, i32, i32) {
    %c0_i32 = arith.constant 0 : i32
    %c0_i32_0 = arith.constant 0 : i32
    %c0_i32_1 = arith.constant 0 : i32
    return %c0_i32, %arg0, %c0_i32_0 : i32, i32, i32
  }
}

</mosaic_0001>

<bundles_post_ra>
// kernel: tpu_custom_call.1
= control target key start
LH: loop header
LB: loop body
LE: loop exit
PB: predicated region body
PF: predicated region fallthrough
CT: control target
= control target key end

     0   :  { %6 = vsyncpa [#allocation3], 0  ;;  %s336_s0 = inlined_call_operand.hbm [shape: f32[2,8,32], index: 0, kind: input, shape index: {}]   ;;  %s337_s1 = inlined_call_operand.hbm [shape: f32[2,8,32], index: 1, kind: output, shape index: {}]  }
   0x1   :  { %7 = vsyncpa [#allocation4], 0  ;;  %s241_s6 = smov [#allocation2]   ;;  %s193_s10 = scalar_lea.hbm %s336_s0, 256 }
   0x2   :  { %s13_s7 = sshll.u32 %s241_s6, 4  ;;  %p194_p0 = scmp.ne.s32.totalorder %s336_s0, %s193_s10  ;;  %s14_s7 = int_to_ptr.vmem [resolvable:$true] %s13_s7 }
   0x3   :  { %p197_p1 = scmp.lt.u32.totalorder %s193_s10, %s336_s0 }
   0x5   :  { %p199_p2 = pnand %p197_p1, %p194_p0 }
   0x7   :  { %202 = shalt.err (!%p199_p2)
}
   0x8   :  { %s203_s15 = scalar_lea.vmem %s14_s7, 256  ;;  %p208_p4 = scmp.lt.s32.totalorder %s14_s7, %s14_s7 }
   0x9   :  { %p204_p3 = scmp.ne.s32.totalorder %s14_s7, %s203_s15  ;;  %p209_p5 = scmp.lt.s32.totalorder %s203_s15, %s203_s15 }
   0xb   :  { %p210_p6 = por %p209_p5, %p208_p4 }
   0xd   :  { %p211_p7 = pnand %p210_p6, %p204_p3 }
   0xf   :  { %214 = shalt.err (!%p211_p7)
}
  0x10   :  { %s242_s16 = smov 128   ;;  %s243_s17 = smov 8  }
  0x11   :  { %19 = dma.hbm_to_vmem [thread:$0]  %s336_s0, 256, %s14_s7, [#allocation3], %s242_s16, %s242_s16, %s243_s17  }
  0x12   :  { %237 = dma.done.wait [#allocation3], 256  }
  0x13   :  { %238 = vsyncadd [#allocation3], 4294967040  ;;  %v283_v0 = vld [vmem:[#allocation2] sm:$0xff]  ;;  %s244_s20 = smov 2   ;;  %s245_s21 = smov 114   ;;  %v287_v1 = vld [vmem:[#allocation2 + $0x8] sm:$0xff] }
  0x14   :  { %33 = vrot.lane.b32.xlu1 %v283_v0, %s244_s20  ;;  %27 = vrot.lane.b32.xlu0 %v283_v0, %s245_s21  ;;  %s246_s22 = smov 116   ;;  %s247_s0 = smov 4   ;;  %vm111_vm0 = vcmask 15360   ;;  %vm114_vm1 = vcmask 31744   ;;  %vm117_vm2 = vcmask 48128   ;;  %vm120_vm3 = vcmask 64512  }
  0x15   :  { %s248_s23 = smov 118   ;;  %s249_s24 = smov 6   ;;  %vm123_vm4 = vcmask 80896   ;;  %vm126_vm5 = vcmask 97280   ;;  %vm129_vm6 = vcmask 113664   ;;  %vm132_vm7 = vcmask 130048  }
  0x16   :  { %s250_s25 = smov 120   ;;  %s251_s26 = smov 122   ;;  %vm135_vm8 = vcmask 146432   ;;  %vm138_vm9 = vcmask 162816   ;;  %vm141_vm10 = vcmask 179200   ;;  %vm144_vm11 = vcmask 195584  }
  0x17   :  { %s252_s27 = smov 10   ;;  %s253_s28 = smov 124   ;;  %vm147_vm12 = vcmask 211968   ;;  %vm150_vm13 = vcmask 228352   ;;  %vm153_vm14 = vcmask 244736   ;;  %vm156_vm15 = vcmask 261120  }
  0x18   :  { %35 = vrot.lane.b32.xlu1 %v287_v1, %s244_s20  ;;  %29 = vrot.lane.b32.xlu0 %v287_v1, %s245_s21  ;;  %s254_s29 = smov 12   ;;  %s255_s30 = smov 126  }
  0x19   :  { %s256_s2 = smov 14   ;;  %s257_s3 = smov [#allocation5]  }
  0x1a   :  { %s164_s4 = sshll.u32 %s257_s3, 4  ;;  %s165_s4 = int_to_ptr.vmem [resolvable:$true] %s164_s4 }
  0x1b   :  { %s215_s5 = scalar_lea.vmem %s165_s4, 256  ;;  %p220_p9 = scmp.lt.s32.totalorder %s165_s4, %s165_s4 }
  0x1c   :  { %41 = vrot.lane.b32.xlu1 %v287_v1, %s246_s22  ;;  %39 = vrot.lane.b32.xlu0 %v283_v0, %s246_s22  ;;  %p216_p8 = scmp.ne.s32.totalorder %s165_s4, %s215_s5  ;;  %p221_p10 = scmp.lt.s32.totalorder %s215_s5, %s215_s5 }
  0x1e   :  { %p222_p11 = por %p221_p10, %p220_p9 }
  0x20   :  { %47 = vrot.lane.b32.xlu1 %v287_v1, %s247_s0  ;;  %45 = vrot.lane.b32.xlu0 %v283_v0, %s247_s0  ;;  %p223_p12 = pnand %p222_p11, %p216_p8 }
  0x24   :  { %53 = vrot.lane.b32.xlu1 %v287_v1, %s248_s23  ;;  %51 = vrot.lane.b32.xlu0 %v283_v0, %s248_s23 }
  0x28   :  { %59 = vrot.lane.b32.xlu1 %v287_v1, %s249_s24  ;;  %57 = vrot.lane.b32.xlu0 %v283_v0, %s249_s24 }
  0x2c   :  { %65 = vrot.lane.b32.xlu1 %v287_v1, %s250_s25  ;;  %63 = vrot.lane.b32.xlu0 %v283_v0, %s250_s25 }
  0x30   :  { %71 = vrot.lane.b32.xlu1 %v287_v1, %s243_s17  ;;  %69 = vrot.lane.b32.xlu0 %v283_v0, %s243_s17 }
  0x34   :  { %77 = vrot.lane.b32.xlu1 %v287_v1, %s251_s26  ;;  %75 = vrot.lane.b32.xlu0 %v283_v0, %s251_s26 }
  0x38   :  { %83 = vrot.lane.b32.xlu1 %v287_v1, %s252_s27  ;;  %81 = vrot.lane.b32.xlu0 %v283_v0, %s252_s27 }
  0x3c   :  { %89 = vrot.lane.b32.xlu1 %v287_v1, %s253_s28  ;;  %87 = vrot.lane.b32.xlu0 %v283_v0, %s253_s28 }
  0x40   :  { %95 = vrot.lane.b32.xlu1 %v287_v1, %s254_s29  ;;  %93 = vrot.lane.b32.xlu0 %v283_v0, %s254_s29 }
  0x44   :  { %101 = vrot.lane.b32.xlu1 %v287_v1, %s255_s30  ;;  %99 = vrot.lane.b32.xlu0 %v283_v0, %s255_s30 }
  0x48   :  { %107 = vrot.lane.b32.xlu1 %v287_v1, %s256_s2  ;;  %105 = vrot.lane.b32.xlu0 %v283_v0, %s256_s2 }
  0x86   :  { %v34_v2 = vpop.permute.xlu1 %33  ;;  %v28_v3 = vpop.permute.xlu0 %27 }
  0x87   :  { %v112_v22 = vsel %vm111_vm0, %v283_v0, %v28_v3 }
  0x88   :  { %v115_v27 = vsel %vm114_vm1, %v112_v22, %v34_v2 }
  0x8a   :  { %v36_v4 = vpop.permute.xlu1 %35  ;;  %v30_v5 = vpop.permute.xlu0 %29 }
  0x8b   :  { %v113_v23 = vsel %vm111_vm0, %v287_v1, %v30_v5 }
  0x8c   :  { %v116_v26 = vsel %vm114_vm1, %v113_v23, %v36_v4 }
  0x8e   :  { %v42_v6 = vpop.permute.xlu1 %41  ;;  %v40_v7 = vpop.permute.xlu0 %39 }
  0x8f   :  { %v119_v28 = vsel %vm117_vm2, %v116_v26, %v42_v6  ;;  %v118_v29 = vsel %vm117_vm2, %v115_v27, %v40_v7 }
  0x92   :  { %v48_v8 = vpop.permute.xlu1 %47  ;;  %v46_v9 = vpop.permute.xlu0 %45 }
  0x93   :  { %v122_v30 = vsel %vm120_vm3, %v119_v28, %v48_v8  ;;  %v121_v31 = vsel %vm120_vm3, %v118_v29, %v46_v9 }
  0x96   :  { %v54_v10 = vpop.permute.xlu1 %53  ;;  %v52_v11 = vpop.permute.xlu0 %51 }
  0x97   :  { %v125_v32 = vsel %vm123_vm4, %v122_v30, %v54_v10  ;;  %v124_v33 = vsel %vm123_vm4, %v121_v31, %v52_v11 }
  0x9a   :  { %v60_v12 = vpop.permute.xlu1 %59  ;;  %v58_v13 = vpop.permute.xlu0 %57 }
  0x9b   :  { %v128_v36 = vsel %vm126_vm5, %v125_v32, %v60_v12  ;;  %v127_v37 = vsel %vm126_vm5, %v124_v33, %v58_v13 }
  0x9e   :  { %v66_v14 = vpop.permute.xlu1 %65  ;;  %v64_v15 = vpop.permute.xlu0 %63 }
  0x9f   :  { %v131_v38 = vsel %vm129_vm6, %v128_v36, %v66_v14  ;;  %v130_v39 = vsel %vm129_vm6, %v127_v37, %v64_v15 }
  0xa2   :  { %v72_v16 = vpop.permute.xlu1 %71  ;;  %v70_v17 = vpop.permute.xlu0 %69 }
  0xa3   :  { %v134_v40 = vsel %vm132_vm7, %v131_v38, %v72_v16  ;;  %v133_v41 = vsel %vm132_vm7, %v130_v39, %v70_v17 }
  0xa6   :  { %v78_v18 = vpop.permute.xlu1 %77  ;;  %v76_v19 = vpop.permute.xlu0 %75 }
  0xa7   :  { %v137_v42 = vsel %vm135_vm8, %v134_v40, %v78_v18  ;;  %v136_v43 = vsel %vm135_vm8, %v133_v41, %v76_v19 }
  0xaa   :  { %v84_v20 = vpop.permute.xlu1 %83  ;;  %v82_v21 = vpop.permute.xlu0 %81 }
  0xab   :  { %v140_v46 = vsel %vm138_vm9, %v137_v42, %v84_v20  ;;  %v139_v47 = vsel %vm138_vm9, %v136_v43, %v82_v21 }
  0xae   :  { %v90_v24 = vpop.permute.xlu1 %89  ;;  %v88_v25 = vpop.permute.xlu0 %87 }
  0xaf   :  { %v143_v48 = vsel %vm141_vm10, %v140_v46, %v90_v24  ;;  %v142_v49 = vsel %vm141_vm10, %v139_v47, %v88_v25 }
  0xb2   :  { %v96_v34 = vpop.permute.xlu1 %95  ;;  %v94_v35 = vpop.permute.xlu0 %93 }
  0xb3   :  { %v146_v50 = vsel %vm144_vm11, %v143_v48, %v96_v34  ;;  %v145_v51 = vsel %vm144_vm11, %v142_v49, %v94_v35 }
  0xb6   :  { %v102_v44 = vpop.permute.xlu1 %101  ;;  %v100_v45 = vpop.permute.xlu0 %99 }
  0xb7   :  { %v149_v52 = vsel %vm147_vm12, %v146_v50, %v102_v44  ;;  %v148_v53 = vsel %vm147_vm12, %v145_v51, %v100_v45 }
  0xba   :  { %v108_v54 = vpop.permute.xlu1 %107  ;;  %v106_v55 = vpop.permute.xlu0 %105 }
  0xbb   :  { %v152_v56 = vsel %vm150_vm13, %v149_v52, %v108_v54  ;;  %v151_v57 = vsel %vm150_vm13, %v148_v53, %v106_v55 }
  0xbc   :  { %v155_v58 = vsel %vm153_vm14, %v152_v56, %v287_v1  ;;  %v154_v59 = vsel %vm153_vm14, %v151_v57, %v283_v0 }
  0xbd   :  { %157 = vst.msk [vmem:[#allocation5] sm:$0xff] %vm156_vm15, %v154_v59  ;;  %158 = vst.msk [vmem:[#allocation5 + $0x8] sm:$0xff] %vm156_vm15, %v155_v58 }
  0xbe   :  { %226 = shalt.err (!%p223_p12)
}
  0xbf   :  { %s227_s8 = scalar_lea.hbm %s337_s1, 256 }
  0xc0   :  { %p228_p13 = scmp.ne.s32.totalorder %s337_s1, %s227_s8  ;;  %p231_p0 = scmp.lt.u32.totalorder %s227_s8, %s337_s1 }
  0xc2   :  { %p233_p1 = pnand %p231_p0, %p228_p13 }
  0xc4   :  { %236 = shalt.err (!%p233_p1)
}
  0xc5   :  { %170 = dma.vmem_to_hbm [thread:$0]  %s165_s4, 256, %s337_s1, [#allocation4], %s242_s16, %s242_s16, %s243_s17  }
  0xc6   :  { %239 = dma.done.wait [#allocation4], 256  }
  0xc7   :  { %240 = vsyncadd [#allocation4], 4294967040 }
  0xc8   :  { %174 = vsyncpa [#allocation3], 1 }
  0xc9   :  { %175 = vsyncpa [#allocation4], 1 }

</bundles_post_ra>
